<compile_context>
chip_gen: v6e
topology: v6e:2x2x1
jax: 0.10.0
libtpu: 0.0.40
codegen_flags: <defaults>
</compile_context>

<pallas_src>
import functools

import jax
import jax.numpy as jnp
from jax import lax
from jax.experimental import pallas as pl
from jax.experimental.pallas import tpu as pltpu

LANE = 128
SUBLANE = 8
ALIGN = SUBLANE * LANE          # 1024 elements
EPS = 1e-7


def _loss_block(w, yt, yp):
    """Elementwise weighted BCE in f32 (VPU adds/muls + EUP logs)."""
    yt = yt.astype(jnp.float32)
    yp = yp.astype(jnp.float32)
    return -(w * yt * jnp.log(yp + EPS) + (1.0 - yt) * jnp.log(1.0 - yp + EPS))


def _wbce_kernel(w_ref, yt_ref, yp_ref, out_ref, *,
                 sub_rows, n_sub_full, n_sub_last, rem_rows, ragged_last):
    p = pl.program_id(0)          # parallel chunk index (dual-TC split on v7x)
    i = pl.program_id(1)          # reduction (tile) index within the chunk

    # Output block is resident across the i axis -> use it as the accumulator.
    @pl.when(i == 0)
    def _():
        out_ref[...] = jnp.zeros_like(out_ref)

    w = w_ref[0]                  # SMEM scalar (f32)

    def accumulate(r0, nrows):
        loss = _loss_block(w,
                           yt_ref[pl.ds(r0, nrows), :],
                           yp_ref[pl.ds(r0, nrows), :])
        # Vreg-wise VPU adds into the (8,128) accumulator; the cross-lane
        # reduce is deferred to the wrapper epilogue.
        out_ref[...] += jnp.sum(loss.reshape(-1, SUBLANE, LANE), axis=0)

    if ragged_last:
        is_last = jnp.logical_and(p == pl.num_programs(0) - 1,
                                  i == pl.num_programs(1) - 1)
        n_sub = jnp.where(is_last, n_sub_last, n_sub_full)
    else:
        n_sub = n_sub_full

    # Stream the tile in sub_rows-row chunks so the big loss intermediate is
    # never materialized / spilled.
    @pl.loop(0, n_sub)
    def _(c):
        r0 = pl.multiple_of(c * sub_rows, sub_rows)
        accumulate(r0, sub_rows)

    # Static, sublane-aligned remainder of the (only) ragged last tile.
    if ragged_last and rem_rows > 0:
        @pl.when(is_last)
        def _():
            accumulate(n_sub_last * sub_rows, rem_rows)


def _is_dual_tensorcore_chip():
    try:
        kind = jax.devices()[0].device_kind.lower()
    except Exception:
        return False
    return ("v7" in kind) or ("7x" in kind)


def weighted_bce_loss(y_true, y_pred, weight_positive, *,
                      tile_rows=4096, sub_rows=128, num_parallel=None):
    """Mean weighted BCE over all elements (matches the PyTorch module)."""
    assert y_true.shape == y_pred.shape
    total_n = int(y_true.size)

    w = jnp.float32(weight_positive)

    # Flatten in native dtype: zero-cost reshape, f32 cast happens in-kernel.
    yt_flat = jnp.ravel(y_true)
    yp_flat = jnp.ravel(y_pred)

    main_n = (total_n // ALIGN) * ALIGN
    tail_n = total_n - main_n

    # Ragged tail (< 1024 elements): tiny pure-JAX reduction (no pad, no copy).
    if tail_n > 0:
        tail_sum = jnp.sum(_loss_block(w, yt_flat[main_n:], yp_flat[main_n:]))
    else:
        tail_sum = jnp.float32(0.0)

    if main_n == 0:
        return tail_sum / jnp.float32(total_n)

    if tail_n > 0:
        # Only for misaligned sizes; the aligned common case is zero-copy.
        yt_main = lax.slice(yt_flat, (0,), (main_n,))
        yp_main = lax.slice(yp_flat, (0,), (main_n,))
    else:
        yt_main = yt_flat
        yp_main = yp_flat

    rows = main_n // LANE                      # multiple of SUBLANE
    yt2d = yt_main.reshape(rows, LANE)
    yp2d = yp_main.reshape(rows, LANE)

    # Tile sizing: large lane-dense tiles amortize per-grid-step overhead.
    # 4096x128 f32 = 2 MiB/block; 2 inputs x 2 buffers = 8 MiB VMEM (fits v5e too).
    if rows >= LANE:
        tile_rows = max(LANE, (min(tile_rows, rows) // LANE) * LANE)
    else:
        tile_rows = rows                       # small input: single exact tile
    sub_rows = min(sub_rows, tile_rows)

    num_tiles = pl.cdiv(rows, tile_rows)
    valid_rows_last = rows - (num_tiles - 1) * tile_rows
    ragged_last = valid_rows_last != tile_rows

    # Dual-TC split only on v7x, and only when it splits the tiles exactly
    # (no phantom tiles, no forced masking).
    if num_parallel is None:
        num_parallel = 2 if _is_dual_tensorcore_chip() else 1
    num_parallel = max(1, int(num_parallel))
    if num_tiles % num_parallel != 0:
        num_parallel = 1
    inner_tiles = num_tiles // num_parallel

    n_sub_full = tile_rows // sub_rows
    n_sub_last = valid_rows_last // sub_rows
    rem_rows = valid_rows_last - n_sub_last * sub_rows   # multiple of 8

    kernel = functools.partial(
        _wbce_kernel, sub_rows=sub_rows, n_sub_full=n_sub_full,
        n_sub_last=n_sub_last, rem_rows=rem_rows, ragged_last=ragged_last)

    def row_map(p, i):
        return (p * inner_tiles + i, 0)

    w_arr = jnp.asarray([weight_positive], dtype=jnp.float32)

    partials = pl.pallas_call(
        kernel,
        out_shape=jax.ShapeDtypeStruct((num_parallel * SUBLANE, LANE), jnp.float32),
        grid_spec=pltpu.PrefetchScalarGridSpec(
            num_scalar_prefetch=0,
            grid=(num_parallel, inner_tiles),
            in_specs=[
                pl.BlockSpec(memory_space=pltpu.MemorySpace.SMEM),   # weight scalar
                pl.BlockSpec((tile_rows, LANE), row_map),            # y_true
                pl.BlockSpec((tile_rows, LANE), row_map),            # y_pred
            ],
            out_specs=pl.BlockSpec((SUBLANE, LANE), lambda p, i: (p, 0)),
        ),
        compiler_params=pltpu.CompilerParams(
            dimension_semantics=("parallel", "arbitrary")),
    )(w_arr, yt2d, yp2d)

    # Tiny epilogue: one cross-lane reduce over the partial-sum blocks + mean.
    return (jnp.sum(partials) + tail_sum) / jnp.float32(total_n)


if __name__ == "__main__":
    key = jax.random.PRNGKey(0)
    k1, k2 = jax.random.split(key)

    # Small segmentation-style NCHW shapes.
    B, C, H, W = 2, 4, 16, 16
    y_true = (jax.random.uniform(k1, (B, C, H, W)) > 0.5).astype(jnp.float32)
    y_pred = jax.random.uniform(k2, (B, C, H, W), minval=0.01, maxval=0.99)

    weight_positive = 2.0

    loss = weighted_bce_loss(y_true, y_pred, weight_positive)
    loss = jax.block_until_ready(loss)

    # Pure-JAX reference check (same formula as the PyTorch module).
    ref = jnp.mean(
        -(weight_positive * y_true * jnp.log(y_pred + EPS)
          + (1.0 - y_true) * jnp.log(1.0 - y_pred + EPS)))
    assert jnp.allclose(loss, ref, rtol=1e-5, atol=1e-6), (loss, ref)

    print("KERNEL_OK")
</pallas_src>

<mosaic_0001>
module attributes {stable_mosaic.version = 11 : i64} {
  func.func @_wbce_kernel(%arg0: i32, %arg1: i32, %arg2: memref<1xf32, #tpu.memory_space<smem>>, %arg3: memref<16x128xf32, #tpu.memory_space<vmem>>, %arg4: memref<16x128xf32, #tpu.memory_space<vmem>>, %arg5: memref<8x128xf32, #tpu.memory_space<vmem>>) attributes {dimension_semantics = [#tpu.dimension_semantics<parallel>, #tpu.dimension_semantics<arbitrary>], iteration_bounds = array<i64: 1, 1>, scalar_prefetch = 0 : i64, scratch_operands = 0 : i64, tpu.core_type = #tpu.core_type<tc>, window_params = [{transform_indices = @transform_0, window_bounds = array<i64: 1>}, {transform_indices = @transform_1, window_bounds = array<i64: 16, 128>}, {transform_indices = @transform_2, window_bounds = array<i64: 16, 128>}, {transform_indices = @transform_3, window_bounds = array<i64: 8, 128>}]} {
    %c0_i32 = arith.constant 0 : i32
    %0 = arith.cmpi eq, %arg1, %c0_i32 : i32
    %1 = arith.extui %0 : i1 to i32
    %c0_i32_0 = arith.constant 0 : i32
    %2 = arith.cmpi ne, %1, %c0_i32_0 : i32
    scf.if %2 {
      %cst_15 = arith.constant 0.000000e+00 : f32
      %34 = vector.broadcast %cst_15 : f32 to vector<8x128xf32>
      %c0_16 = arith.constant 0 : index
      %c0_17 = arith.constant 0 : index
      %35 = vector.load %arg5[%c0_16, %c0_17] : memref<8x128xf32, #tpu.memory_space<vmem>>, vector<8x128xf32>
      tpu.vector_store %arg5[%c0_16, %c0_17], %34 {strides = array<i32>} : memref<8x128xf32, #tpu.memory_space<vmem>>, vector<8x128xf32>,
    } else {
    }
    %c0 = arith.constant 0 : index
    %3 = memref.load %arg2[%c0] : memref<1xf32, #tpu.memory_space<smem>>
    %c0_i32_1 = arith.constant 0 : i32
    %c1_i32 = arith.constant 1 : i32
    %4 = arith.muli %c0_i32_1, %c1_i32 : i32
    %c0_i32_2 = arith.constant 0 : i32
    %5 = arith.addi %c0_i32_2, %4 : i32
    %c16_i32 = arith.constant 16 : i32
    %6 = arith.muli %5, %c16_i32 : i32
    %7 = tpu.assume_multiple %6, 16 : i32
    %8 = arith.index_cast %7 : i32 to index
    %c0_3 = arith.constant 0 : index
    %9 = vector.load %arg3[%8, %c0_3] : memref<16x128xf32, #tpu.memory_space<vmem>>, vector<16x128xf32>
    %10 = arith.index_cast %7 : i32 to index
    %c0_4 = arith.constant 0 : index
    %11 = vector.load %arg4[%10, %c0_4] : memref<16x128xf32, #tpu.memory_space<vmem>>, vector<16x128xf32>
    %12 = vector.broadcast %3 : f32 to vector<16x128xf32>
    %13 = arith.mulf %12, %9 : vector<16x128xf32>
    %cst = arith.constant 1.000000e-07 : f32
    %14 = vector.broadcast %cst : f32 to vector<16x128xf32>
    %15 = arith.addf %11, %14 : vector<16x128xf32>
    %16 = math.log %15 : vector<16x128xf32>
    %17 = arith.mulf %13, %16 : vector<16x128xf32>
    %cst_5 = arith.constant 1.000000e+00 : f32
    %18 = vector.broadcast %cst_5 : f32 to vector<16x128xf32>
    %19 = arith.subf %18, %9 : vector<16x128xf32>
    %cst_6 = arith.constant 1.000000e+00 : f32
    %20 = vector.broadcast %cst_6 : f32 to vector<16x128xf32>
    %21 = arith.subf %20, %11 : vector<16x128xf32>
    %cst_7 = arith.constant 1.000000e-07 : f32
    %22 = vector.broadcast %cst_7 : f32 to vector<16x128xf32>
    %23 = arith.addf %21, %22 : vector<16x128xf32>
    %24 = math.log %23 : vector<16x128xf32>
    %25 = arith.mulf %19, %24 : vector<16x128xf32>
    %26 = arith.addf %17, %25 : vector<16x128xf32>
    %cst_8 = arith.constant 0.000000e+00 : f32
    %27 = vector.broadcast %cst_8 : f32 to vector<16x128xf32>
    %28 = arith.subf %27, %26 : vector<16x128xf32>
    %c0_9 = arith.constant 0 : index
    %c0_10 = arith.constant 0 : index
    %29 = vector.load %arg5[%c0_9, %c0_10] : memref<8x128xf32, #tpu.memory_space<vmem>>, vector<8x128xf32>
    %30 = vector.shape_cast %28 : vector<16x128xf32> to vector<2x8x128xf32>
    %cst_11 = arith.constant dense<0.000000e+00> : vector<8x128xf32>
    %31 = vector.multi_reduction <add>, %30, %cst_11 [0] : vector<2x8x128xf32> to vector<8x128xf32>
    %32 = arith.addf %29, %31 : vector<8x128xf32>
    %c0_12 = arith.constant 0 : index
    %c0_13 = arith.constant 0 : index
    %33 = vector.load %arg5[%c0_12, %c0_13] : memref<8x128xf32, #tpu.memory_space<vmem>>, vector<8x128xf32>
    tpu.vector_store %arg5[%c0_12, %c0_13], %32 {strides = array<i32>} : memref<8x128xf32, #tpu.memory_space<vmem>>, vector<8x128xf32>,
    %c1_i32_14 = arith.constant 1 : i32
    return
  }
  func.func @transform_0(%arg0: i32, %arg1: i32) -> i32 {
    %c0_i32 = arith.constant 0 : i32
    %c0_i32_0 = arith.constant 0 : i32
    return %c0_i32 : i32
  }
  func.func @transform_1(%arg0: i32, %arg1: i32) -> (i32, i32) {
    %c1_i32 = arith.constant 1 : i32
    %0 = arith.muli %arg0, %c1_i32 : i32
    %1 = arith.addi %0, %arg1 : i32
    %c0_i32 = arith.constant 0 : i32
    %c0_i32_0 = arith.constant 0 : i32
    return %1, %c0_i32 : i32, i32
  }
  func.func @transform_2(%arg0: i32, %arg1: i32) -> (i32, i32) {
    %c1_i32 = arith.constant 1 : i32
    %0 = arith.muli %arg0, %c1_i32 : i32
    %1 = arith.addi %0, %arg1 : i32
    %c0_i32 = arith.constant 0 : i32
    %c0_i32_0 = arith.constant 0 : i32
    return %1, %c0_i32 : i32, i32
  }
  func.func @transform_3(%arg0: i32, %arg1: i32) -> (i32, i32) {
    %c0_i32 = arith.constant 0 : i32
    %c0_i32_0 = arith.constant 0 : i32
    return %arg0, %c0_i32 : i32, i32
  }
}

</mosaic_0001>

<bundles_post_ra>
// kernel: tpu_custom_call.1
= control target key start
LH: loop header
LB: loop body
LE: loop exit
PB: predicated region body
PF: predicated region fallthrough
CT: control target
= control target key end

     0   :  { %9 = vsyncpa [#allocation4], 0  ;;  %s230_s0 = inlined_call_operand.<no memory space> [shape: f32[1], index: 0, kind: input, shape index: {}]   ;;  %s231_s1 = inlined_call_operand.hbm [shape: f32[16,128], index: 1, kind: input, shape index: {}]   ;;  %s232_s2 = inlined_call_operand.hbm [shape: f32[16,128], index: 2, kind: input, shape index: {}]   ;;  %s233_s3 = inlined_call_operand.hbm [shape: f32[8,128], index: 3, kind: output, shape index: {}]  }
   0x1   :  { %10 = vsyncpa [#allocation7], 0 }
   0x2   :  { %11 = vsyncpa [#allocation5], 0  ;;  %s193_s12 = smov [#allocation3]  }
   0x3   :  { %s23_s13 = sshll.u32 %s193_s12, 4  ;;  %s24_s13 = int_to_ptr.vmem [resolvable:$true] %s23_s13 }
   0x4   :  { %s135_s14 = scalar_lea.vmem %s24_s13, 256  ;;  %p140_p1 = scmp.lt.s32.totalorder %s24_s13, %s24_s13 }
   0x5   :  { %p136_p0 = scmp.ne.s32.totalorder %s24_s13, %s135_s14  ;;  %p141_p2 = scmp.lt.s32.totalorder %s135_s14, %s135_s14 }
   0x7   :  { %p142_p3 = por %p141_p2, %p140_p1 }
   0x9   :  { %p143_p4 = pnand %p142_p3, %p136_p0 }
   0xb   :  { %146 = shalt.err (!%p143_p4)
}
   0xc   :  { %s194_s15 = smov 128   ;;  %s195_s16 = smov 8  }
   0xd   :  { %29 = dma.hbm_to_vmem [thread:$0]  %s231_s1, 256, %s24_s13, [#allocation4], %s194_s15, %s194_s15, %s195_s16  }
   0xe   :  { %s196_s19 = smov [#allocation6]  }
   0xf   :  { %s39_s20 = sshll.u32 %s196_s19, 4  ;;  %s40_s20 = int_to_ptr.vmem [resolvable:$true] %s39_s20 }
  0x10   :  { %s155_s21 = scalar_lea.vmem %s40_s20, 256  ;;  %p160_p6 = scmp.lt.s32.totalorder %s40_s20, %s40_s20 }
  0x11   :  { %p156_p5 = scmp.ne.s32.totalorder %s40_s20, %s155_s21  ;;  %p161_p7 = scmp.lt.s32.totalorder %s155_s21, %s155_s21 }
  0x13   :  { %p162_p8 = por %p161_p7, %p160_p6 }
  0x15   :  { %p163_p9 = pnand %p162_p8, %p156_p5 }
  0x17   :  { %166 = shalt.err (!%p163_p9)
}
  0x18   :  { %45 = dma.hbm_to_vmem [thread:$0]  %s232_s2, 256, %s40_s20, [#allocation7], %s194_s15, %s194_s15, %s195_s16  }
  0x19   :  { %187 = dma.done.wait [#allocation4], 256  }
  0x1a   :  { %188 = vsyncadd [#allocation4], 4294967040 }
  0x1b   :  { %189 = dma.done.wait [#allocation7], 256  }
  0x1c   :  { %190 = vsyncadd [#allocation7], 4294967040  ;;  %v64_v0 = vld [vmem:[#allocation6] sm:$0xff]  ;;  %v65_v1 = vld [vmem:[#allocation6 + $0x8] sm:$0xff]  ;;  %v66_v9 = vstv %s230_s0  ;;  %s197_s0 = smov [#allocation8]  }
  0x1d   :  { %v69_v2 = vadd.f32 1e-07, %v64_v0  ;;  %v70_v3 = vadd.f32 1e-07, %v65_v1  ;;  %v79_v4 = vsub.f32 1.0, %v64_v0  ;;  %v80_v5 = vsub.f32 1.0, %v65_v1 }
  0x1e   :  { %v62_v8 = vld [vmem:[#allocation3] sm:$0xff]  ;;  %v63_v10 = vld [vmem:[#allocation3 + $0x8] sm:$0xff]  ;;  %s103_s2 = sshll.u32 %s197_s0, 4  ;;  %s104_s2 = int_to_ptr.vmem [resolvable:$true] %s103_s2 }
  0x1f   :  { %119 = vlog2.f32 %v69_v2  ;;  %v81_v6 = vadd.f32 1e-07, %v79_v4  ;;  %v82_v7 = vadd.f32 1e-07, %v80_v5  ;;  %v67_v12 = vmul.f32 %v66_v9, %v62_v8  ;;  %s167_s25 = scalar_lea.vmem %s104_s2, 128  ;;  %p172_p11 = scmp.lt.s32.totalorder %s104_s2, %s104_s2 }
  0x20   :  { %121 = vlog2.f32 %v70_v3  ;;  %v68_v14 = vmul.f32 %v66_v9, %v63_v10  ;;  %v77_v17 = vsub.f32 1.0, %v62_v8  ;;  %v78_v19 = vsub.f32 1.0, %v63_v10  ;;  %p168_p10 = scmp.ne.s32.totalorder %s104_s2, %s167_s25  ;;  %p173_p12 = scmp.lt.s32.totalorder %s167_s25, %s167_s25 }
  0x21   :  { %123 = vlog2.f32 %v81_v6 }
  0x22   :  { %125 = vlog2.f32 %v82_v7  ;;  %p174_p13 = por %p173_p12, %p172_p11 }
  0x24   :  { %p175_p0 = pnand %p174_p13, %p168_p10 }
  0x2c   :  { %v120_v11 = vpop.eup %119 }
  0x2d   :  { %v122_v13 = vpop.eup %121  ;;  %v72_v15 = vmul.f32 0.6931472, %v120_v11 }
  0x2e   :  { %v74_v16 = vmul.f32 0.6931472, %v122_v13  ;;  %v124_v18 = vpop.eup %123 }
  0x2f   :  { %v126_v20 = vpop.eup %125  ;;  %v75_v21 = vmul.f32 %v72_v15, %v67_v12  ;;  %v84_v22 = vmul.f32 0.6931472, %v124_v18 }
  0x30   :  { %v76_v23 = vmul.f32 %v74_v16, %v68_v14  ;;  %v86_v24 = vmul.f32 0.6931472, %v126_v20 }
  0x31   :  { %v87_v25 = vmul.f32 %v84_v22, %v77_v17 }
  0x32   :  { %v88_v26 = vmul.f32 %v86_v24, %v78_v19 }
  0x33   :  { %v89_v27 = vadd.f32 %v87_v25, %v75_v21 }
  0x34   :  { %v90_v28 = vadd.f32 %v88_v26, %v76_v23 }
  0x35   :  { %v91_v29 = vsub.f32 0.0, %v89_v27 }
  0x36   :  { %v92_v30 = vsub.f32 0.0, %v90_v28 }
  0x38   :  { %v94_v31 = vadd.f32 %v92_v30, %v91_v29 }
  0x3a   :  { %96 = vst [vmem:[#allocation8] sm:$0xff] %v94_v31 }
  0x3b   :  { %178 = shalt.err (!%p175_p0)
}
  0x3c   :  { %106 = dma.vmem_to_hbm [thread:$0]  %s104_s2, 128, %s233_s3, [#allocation5]  }
  0x3d   :  { %191 = dma.done.wait [#allocation5], 128  }
  0x3e   :  { %192 = vsyncadd [#allocation5], 4294967168 }
  0x3f   :  { %110 = vsyncpa [#allocation4], 1 }
  0x40   :  { %111 = vsyncpa [#allocation7], 1 }
  0x41   :  { %112 = vsyncpa [#allocation5], 1 }

</bundles_post_ra>
